<compile_context>
chip_gen: v7x
topology: tpu7x:2x2x1
jax: 0.10.0
libtpu: 0.0.40
codegen_flags: <defaults>
</compile_context>

<pallas_src>
import jax
import jax.numpy as jnp
from jax.experimental import pallas as pl
from jax.experimental.pallas import tpu as pltpu

_SUB = 16  # sublane granularity matching bf16 packing (also satisfies f32's 8)


def _cdiv(a, b):
    return -(-a // b)


def _round_up(a, m):
    return _cdiv(a, m) * m


def _net_kernel(x_ref, w1_ref, b1_ref, w2_ref, b2_ref, o_ref):
    # ---- Linear(1400 -> 256) with folded BatchNorm: bf16 MXU, f32 acc ----
    h = jnp.dot(x_ref[...], w1_ref[...], preferred_element_type=jnp.float32)
    h = jnp.maximum(h + b1_ref[...], 0.0)          # bias + ReLU (f32 epilogue)
    # ---- Dropout(p=0.3) is identity at eval time ----
    # ---- Linear(256 -> 1): contract hidden dim -> lane-dense (1, TB) row ----
    logits = jnp.einsum("oh,bh->ob", w2_ref[...], h,
                        preferred_element_type=jnp.float32) + b2_ref[...]
    # ---- Sigmoid (stable tanh identity; tanh runs on the EUP) ----
    o_ref[...] = (0.5 * (jnp.tanh(0.5 * logits) + 1.0))[None]     # (1, 1, TB)


def net_forward(x, params, *, block_b=2048):
    """x: [B, 1400] (bf16 preferred) -> [B, 1] float32 (eval-mode forward)."""
    w1, b1, gamma, beta, run_mean, run_var, w2, b2 = params
    B, F = x.shape
    H = w1.shape[1]
    eps = 1e-5

    # Stream activations in bf16 (the x stream is the HBM bottleneck). If the
    # caller already supplies bf16 this is a no-op; otherwise the cast should
    # ideally be fused into the upstream producer rather than paid standalone.
    if x.dtype != jnp.bfloat16:
        x = x.astype(jnp.bfloat16)

    # Fold eval-mode BatchNorm into the first linear layer (done in f32).
    scale = gamma / jnp.sqrt(run_var + eps)                        # [256]
    w1_folded = (w1 * scale[None, :]).astype(jnp.bfloat16)         # [1400,256]
    b1_folded = ((b1 - run_mean) * scale + beta).reshape(1, H)     # [1,256]
    w2_row = w2.reshape(1, H).astype(jnp.float32)                  # [1,256]
    b2_11 = b2.reshape(1, 1).astype(jnp.float32)                   # [1,1]

    # Batch tiling: even number of tiles (>= 2) so the "parallel" batch axis
    # keeps both v7x TensorCores busy; tile rows are a multiple of 16 sublanes.
    block_b = max(_SUB, (block_b // _SUB) * _SUB)
    num_tiles = 2 * _cdiv(_cdiv(B, block_b), 2)                    # even, >= 2
    tb = min(block_b, max(_SUB, _round_up(_cdiv(B, num_tiles), _SUB)))
    b_pad = num_tiles * tb
    x_in = x if b_pad == B else jnp.pad(x, ((0, b_pad - B), (0, 0)))

    resident = lambda shape: pl.BlockSpec(shape, lambda i: (0,) * len(shape))

    out = pl.pallas_call(
        _net_kernel,
        out_shape=jax.ShapeDtypeStruct((num_tiles, 1, tb), jnp.float32),
        grid=(num_tiles,),
        in_specs=[
            pl.BlockSpec((tb, F), lambda i: (i, 0)),   # x tile [TB, 1400] bf16
            resident((F, H)),                          # W1'    [1400, 256] bf16
            resident((1, H)),                          # b1'    [1, 256]
            resident((1, H)),                          # w2 row [1, 256]
            resident((1, 1)),                          # b2     [1, 1]
        ],
        # Lane-dense output row per grid step (batch on the lane axis).
        out_specs=pl.BlockSpec((1, 1, tb), lambda i: (i, 0, 0)),
        compiler_params=pltpu.CompilerParams(
            dimension_semantics=("parallel",),
            # TB=2048 bf16: ~11.5 MB double-buffered x + ~1.4 MB W1; 32 MiB
            # gives headroom on v5e (16 MiB default scoped) without crowding
            # v7x's 64 MiB physical VMEM.
            vmem_limit_bytes=32 * 1024 * 1024),
    )(x_in, w1_folded, b1_folded, w2_row, b2_11)

    out = out.reshape(b_pad, 1)
    return out[:B] if b_pad != B else out


def _reference_forward(x, params):
    """Plain-JAX eval-mode reference (f32) for correctness checking."""
    w1, b1, gamma, beta, run_mean, run_var, w2, b2 = params
    eps = 1e-5
    h = x @ w1 + b1
    h = (h - run_mean) / jnp.sqrt(run_var + eps) * gamma + beta
    h = jnp.maximum(h, 0.0)
    out = h @ w2 + b2
    return 1.0 / (1.0 + jnp.exp(-out))


def init_params(key):
    """Deterministic parameter init matching the PyTorch module's shapes."""
    k1, k2, k3, k4 = jax.random.split(key, 4)
    in1, h, out = 1400, 256, 1
    lim1 = 1.0 / jnp.sqrt(in1)
    w1 = jax.random.uniform(k1, (in1, h), jnp.float32, -lim1, lim1)
    b1 = jax.random.uniform(k2, (h,), jnp.float32, -lim1, lim1)
    gamma = jnp.ones((h,), jnp.float32)
    beta = jnp.zeros((h,), jnp.float32)
    run_mean = jnp.zeros((h,), jnp.float32)
    run_var = jnp.ones((h,), jnp.float32)
    lim2 = 1.0 / jnp.sqrt(h)
    w2 = jax.random.uniform(k3, (h, out), jnp.float32, -lim2, lim2)
    b2 = jax.random.uniform(k4, (out,), jnp.float32, -lim2, lim2)
    return (w1, b1, gamma, beta, run_mean, run_var, w2, b2)


if __name__ == "__main__":
    key = jax.random.PRNGKey(0)
    pkey, xkey, x2key = jax.random.split(key, 3)
    params = init_params(pkey)

    # Small case (B=8): even-tile padding path, default big block_b.
    B = 8
    x = jax.random.normal(xkey, (B, 1400), jnp.float32)
    y = net_forward(x.astype(jnp.bfloat16), params)
    jax.block_until_ready(y)
    assert y.shape == (B, 1)
    assert bool(jnp.all((y >= 0.0) & (y <= 1.0)))
    y_ref = _reference_forward(x, params)
    assert bool(jnp.allclose(y, y_ref, atol=2e-2)), "mismatch vs reference"

    # Multi-tile grid + batch padding (B=40, block_b=16 -> 4 tiles of 16).
    B2 = 40
    x2 = jax.random.normal(x2key, (B2, 1400), jnp.float32)
    y2 = net_forward(x2.astype(jnp.bfloat16), params, block_b=16)
    jax.block_until_ready(y2)
    assert y2.shape == (B2, 1)
    y2_ref = _reference_forward(x2, params)
    assert bool(jnp.allclose(y2, y2_ref, atol=2e-2)), "mismatch vs reference"

    print("KERNEL_OK")
</pallas_src>

<mosaic_0001>
module attributes {stable_mosaic.version = 11 : i64} {
  func.func @_net_kernel(%arg0: i32, %arg1: memref<16x1400xbf16, #tpu.memory_space<vmem>>, %arg2: memref<1400x256xbf16, #tpu.memory_space<vmem>>, %arg3: memref<1x256xf32, #tpu.memory_space<vmem>>, %arg4: memref<1x256xf32, #tpu.memory_space<vmem>>, %arg5: memref<1x1xf32, #tpu.memory_space<vmem>>, %arg6: memref<1x1x16xf32, #tpu.memory_space<vmem>>) attributes {dimension_semantics = [#tpu.dimension_semantics<parallel>], iteration_bounds = array<i64: 2>, scalar_prefetch = 0 : i64, scratch_operands = 0 : i64, tpu.core_type = #tpu.core_type<tc>, window_params = [{transform_indices = @transform_0, window_bounds = array<i64: 16, 1400>}, {pipeline_mode = #tpu.pipeline_mode<synchronous>, transform_indices = @transform_1, window_bounds = array<i64: 1400, 256>}, {pipeline_mode = #tpu.pipeline_mode<synchronous>, transform_indices = @transform_2, window_bounds = array<i64: 1, 256>}, {pipeline_mode = #tpu.pipeline_mode<synchronous>, transform_indices = @transform_3, window_bounds = array<i64: 1, 256>}, {pipeline_mode = #tpu.pipeline_mode<synchronous>, transform_indices = @transform_4, window_bounds = array<i64: 1, 1>}, {transform_indices = @transform_5, window_bounds = array<i64: 1, 1, 16>}]} {
    %c0 = arith.constant 0 : index
    %c0_0 = arith.constant 0 : index
    %0 = vector.load %arg1[%c0, %c0_0] : memref<16x1400xbf16, #tpu.memory_space<vmem>>, vector<16x1400xbf16>
    %c0_1 = arith.constant 0 : index
    %c0_2 = arith.constant 0 : index
    %1 = vector.load %arg2[%c0_1, %c0_2] : memref<1400x256xbf16, #tpu.memory_space<vmem>>, vector<1400x256xbf16>
    %cst = arith.constant dense<0.000000e+00> : vector<16x256xf32>
    %2 = tpu.matmul %0, %1, %cst {dimension_numbers = #tpu.dot_dimension_numbers<[1], [0], [0], [1], [0, 0, 1, 1], [], []>} : vector<16x1400xbf16>, vector<1400x256xbf16>, vector<16x256xf32> -> vector<16x256xf32>
    %c0_3 = arith.constant 0 : index
    %c0_4 = arith.constant 0 : index
    %3 = vector.load %arg3[%c0_3, %c0_4] : memref<1x256xf32, #tpu.memory_space<vmem>>, vector<1x256xf32>
    %4 = vector.broadcast %3 : vector<1x256xf32> to vector<16x256xf32>
    %5 = arith.addf %2, %4 : vector<16x256xf32>
    %cst_5 = arith.constant 0.000000e+00 : f32
    %6 = vector.broadcast %cst_5 : f32 to vector<16x256xf32>
    %7 = arith.maximumf %5, %6 : vector<16x256xf32>
    %c0_6 = arith.constant 0 : index
    %c0_7 = arith.constant 0 : index
    %8 = vector.load %arg4[%c0_6, %c0_7] : memref<1x256xf32, #tpu.memory_space<vmem>>, vector<1x256xf32>
    "tpu.trace_start"() <{level = 10 : i32, message = "oh,bh->ob"}> : () -> ()
    %cst_8 = arith.constant dense<0.000000e+00> : vector<1x16xf32>
    %9 = tpu.matmul %8, %7, %cst_8 {dimension_numbers = #tpu.dot_dimension_numbers<[1], [1], [0], [0], [0, 0, 1, 0], [], []>} : vector<1x256xf32>, vector<16x256xf32>, vector<1x16xf32> -> vector<1x16xf32>
    "tpu.trace_stop"() : () -> ()
    %c0_9 = arith.constant 0 : index
    %c0_10 = arith.constant 0 : index
    %10 = vector.load %arg5[%c0_9, %c0_10] : memref<1x1xf32, #tpu.memory_space<vmem>>, vector<1x1xf32>
    %11 = vector.broadcast %10 : vector<1x1xf32> to vector<1x16xf32>
    %12 = arith.addf %9, %11 : vector<1x16xf32>
    %cst_11 = arith.constant 5.000000e-01 : f32
    %13 = vector.broadcast %cst_11 : f32 to vector<1x16xf32>
    %14 = arith.mulf %13, %12 : vector<1x16xf32>
    %15 = math.tanh %14 : vector<1x16xf32>
    %cst_12 = arith.constant 1.000000e+00 : f32
    %16 = vector.broadcast %cst_12 : f32 to vector<1x16xf32>
    %17 = arith.addf %15, %16 : vector<1x16xf32>
    %cst_13 = arith.constant 5.000000e-01 : f32
    %18 = vector.broadcast %cst_13 : f32 to vector<1x16xf32>
    %19 = arith.mulf %18, %17 : vector<1x16xf32>
    %20 = vector.shape_cast %19 : vector<1x16xf32> to vector<1x1x16xf32>
    %c0_14 = arith.constant 0 : index
    %c0_15 = arith.constant 0 : index
    %c0_16 = arith.constant 0 : index
    %21 = vector.load %arg6[%c0_14, %c0_15, %c0_16] : memref<1x1x16xf32, #tpu.memory_space<vmem>>, vector<1x1x16xf32>
    tpu.vector_store %arg6[%c0_14, %c0_15, %c0_16], %20 {strides = array<i32>} : memref<1x1x16xf32, #tpu.memory_space<vmem>>, vector<1x1x16xf32>,
    return
  }
  func.func @transform_0(%arg0: i32) -> (i32, i32) {
    %c0_i32 = arith.constant 0 : i32
    %c0_i32_0 = arith.constant 0 : i32
    return %arg0, %c0_i32 : i32, i32
  }
  func.func @transform_1(%arg0: i32) -> (i32, i32) {
    %c0_i32 = arith.constant 0 : i32
    %c0_i32_0 = arith.constant 0 : i32
    %c0_i32_1 = arith.constant 0 : i32
    return %c0_i32, %c0_i32_0 : i32, i32
  }
  func.func @transform_2(%arg0: i32) -> (i32, i32) {
    %c0_i32 = arith.constant 0 : i32
    %c0_i32_0 = arith.constant 0 : i32
    %c0_i32_1 = arith.constant 0 : i32
    return %c0_i32, %c0_i32_0 : i32, i32
  }
  func.func @transform_3(%arg0: i32) -> (i32, i32) {
    %c0_i32 = arith.constant 0 : i32
    %c0_i32_0 = arith.constant 0 : i32
    %c0_i32_1 = arith.constant 0 : i32
    return %c0_i32, %c0_i32_0 : i32, i32
  }
  func.func @transform_4(%arg0: i32) -> (i32, i32) {
    %c0_i32 = arith.constant 0 : i32
    %c0_i32_0 = arith.constant 0 : i32
    %c0_i32_1 = arith.constant 0 : i32
    return %c0_i32, %c0_i32_0 : i32, i32
  }
  func.func @transform_5(%arg0: i32) -> (i32, i32, i32) {
    %c0_i32 = arith.constant 0 : i32
    %c0_i32_0 = arith.constant 0 : i32
    %c0_i32_1 = arith.constant 0 : i32
    return %arg0, %c0_i32, %c0_i32_0 : i32, i32, i32
  }
}

</mosaic_0001>

<bundles_post_ra>
// kernel: tpu_custom_call.1
= control target key start
LH: loop header
LB: loop body
LE: loop exit
PB: predicated region body
PF: predicated region fallthrough
CT: control target
= control target key end

     0   :  { %s2819_s0 = inlined_call_operand.hbm [shape: bf16[32,1400], index: 0, kind: input, shape index: {}]   ;;  %s2820_s1 = inlined_call_operand.hbm [shape: bf16[1400,256], index: 1, kind: input, shape index: {}]   ;;  %s2821_s2 = inlined_call_operand.vmem [shape: f32[1,256], index: 2, kind: input, shape index: {}]   ;;  %s2822_s3 = inlined_call_operand.vmem [shape: f32[1,256], index: 3, kind: input, shape index: {}]   ;;  %s2823_s4 = inlined_call_operand.<no memory space> [shape: f32[1,1], index: 4, kind: input, shape index: {}]   ;;  %s2824_s5 = inlined_call_operand.hbm [shape: f32[2,1,16], index: 5, kind: output, shape index: {}]  }
   0x1   :  { %v10_v0 = vstv %s2823_s4 }
   0x2   :  { %11 = vst [vmem:[#allocation2] sm:$0x1] %v10_v0 }
   0x3   :  { %12 = vsyncpa [#allocation4], 0 }
   0x4   :  { %14 = vsyncpa [#allocation4 + $0x1], 0 }
   0x5   :  { %15 = vsyncpa [#allocation7], 0 }
   0x6   :  { %16 = vsyncpa [#allocation5], 0 }
   0x7   :  { %18 = vsyncpa [#allocation5 + $0x1], 0  ;;  %s2598_s20 = smov 0   ;;  %s2600_s21 = smov 0  }
   0x8   :  { %s2602_s22 = smov 0   ;;  %s2604_s23 = smov 0  }
   0x9 LB: > { %s2619_s4 = sadd.s32 4294967295, %s2555_s23   ;;  %s1851_s24 = sadd.s32 4294967294, %s2555_s23   ;;  %s2555_s23 = sphi %s2604_s23, %s2844_s23   ;;  %s2551_s22 = sphi %s2602_s22, %s2843_s22   ;;  %s2547_s21 = sphi %s2600_s21, %s2842_s21   ;;  %s2543_s20 = sphi %s2598_s20, %s2841_s20  }
   0xa   : > { %p44_p0 = scmp.ne.s32.totalorder %s2547_s21, %s2543_s20  ;;  %p2825_p1 = scmp.eq.s32.totalorder %s2619_s4, 0 }
   0xb   : > { %p158_p3 = scmp.eq.s32.totalorder %s1851_s24, 1  ;;  %p1852_p5 = scmp.ge.s32.totalorder %s2555_s23, 1 }
   0xc   : > { %p2628_p4 = por %p2825_p1, %p44_p0  ;;  %p165_p7 = scmp.lt.s32.totalorder %s2555_s23, 3 }
   0xd   : > { %p2633_p6 = por %p158_p3, %p44_p0  ;;  %s2557_s28 = smov [#allocation6]  }
   0xe   : > { %s2828_s25 = scalar_select %p2628_p4, 1, 0 }
   0xf   : > { %s2829_s26 = scalar_select %p2633_p6, 1, 0 }
  0x10   : > { %p2638_p8 = pnand %p1852_p5, %p165_p7  ;;  %s177_s29 = sshll.u32 %s2557_s28, 4  ;;  %s2642_s29 = int_to_ptr.vmem [resolvable:$true] %s177_s29 }
  0x11   : > { %s2654_s6 = sadd.s32 1, %s2555_s23   ;;  %s31_s7 = sadd.s32 1, %s2551_s22 }
  0x12   : > { %s2830_s27 = scalar_select %p2638_p8, 1, 0 }
  0x13   : > { %p2091_p9 = pneg %p2638_p8  ;;  %s28_s8 = ssub.s32 %s2555_s23, %s2654_s6 }
  0x14   : > { %s2427_s11 = scalar_lea.hbm %s2820_s1, 22400 }
  0x15   : > { %p2649_p11 = pnand %p2091_p9, %p2825_p1  ;;  %p2428_p12 = scmp.ne.s32.totalorder %s2820_s1, %s2427_s11 }
  0x16   : > { %p2434_p5 = scmp.lt.u32.totalorder %s2427_s11, %s2820_s1 }
  0x17   : > { %p2429_p13 = pneg %p2649_p11 }
  0x19   : > { %p2430_p0 = pnand %p2429_p13, %p2428_p12 }
  0x1b   : > { %p2431_p3 = pneg %p2430_p0 }
  0x1d   : > { %p2436_p7 = pnand %p2434_p5, %p2431_p3 }
  0x1f   : > { %2439 = shalt.err (!%p2436_p7)
}
  0x20   : > { %s2440_s16 = scalar_lea.vmem %s2642_s29, 22400  ;;  %p2448_p2 = scmp.lt.s32.totalorder %s2642_s29, %s2642_s29 }
  0x21   : > { %p2441_p9 = scmp.ne.s32.totalorder %s2642_s29, %s2440_s16  ;;  %p2449_p6 = scmp.lt.s32.totalorder %s2440_s16, %s2440_s16 }
  0x23   : > { %p2443_p10 = pnand %p2441_p9, %p2429_p13  ;;  %p2450_p4 = por %p2449_p6, %p2448_p2 }
  0x25   : > { %p2444_p1 = pneg %p2443_p10 }
  0x27   : > { %p2451_p8 = pnand %p2450_p4, %p2444_p1 }
  0x29   : > { %2454 = shalt.err (!%p2451_p8)
}
  0x2a   : > { %s2558_s17 = smov 128   ;;  %s2559_s18 = smov 8  }
  0x2b   : > { %2094 = dma.hbm_to_vmem [thread:$0]  (!%p2649_p11), %s2820_s1, 22400, %s2642_s29, [#allocation7], %s2558_s17, %s2558_s17, %s2559_s18  }
  0x2c   : > { %p29_p2 = scmp.eq.s32.totalorder %s28_s8, 0  ;;  %p38_p1 = scmp.ne.s32.totalorder %s2551_s22, %s2547_s21 }
  0x2d   : > { %p39_p4 = scmp.eq.s32.totalorder %s2555_s23, 0  ;;  %p2104_p6 = scmp.lt.s32.totalorder %s2555_s23, 2 }
  0x2e   : > { %s2685_s28 = scalar_select %p29_p2, %s2551_s22, %s31_s7  }
  0x2f   : > { %p40_p8 = por %p39_p4, %p38_p1  ;;  %p2832_p10 = scmp.eq.s32.totalorder %s2619_s4, 1 }
  0x30   : > { %s200_s10 = sand.u32 1, %s2551_s22   ;;  %s2081_s11 = smul.u32 1408, %s2555_s23 }
  0x31   : > { %p2689_p12 = por %p2832_p10, %p38_p1  ;;  %s2080_s12 = smul.u32 88, %s200_s10 }
  0x32   : > { %s2698_s14 = scalar_lea.hbm %s2819_s0, %s2081_s11  ;;  %p2700_p11 = pnand %p2104_p6, %p40_p8 }
  0x33   : > { %s204_s7 = scalar_lea.vmem [#allocation3], %s2080_s12  ;;  %s2706_s15 = scalar_lea.sflag [#allocation4], %s200_s10 }
  0x34   : > { %s212_s8 = sshll.u32 %s204_s7, 4  ;;  %s2455_s16 = scalar_lea.hbm %s2698_s14, 1408  ;;  %s2704_s8 = int_to_ptr.vmem [resolvable:$true] %s212_s8 }
  0x35   : > { %p2456_p13 = scmp.ne.s32.totalorder %s2698_s14, %s2455_s16  ;;  %p2457_p0 = pneg %p2700_p11 }
  0x36   : > { %s2460_s19 = scalar_lea.hbm %s2819_s0, 2816  ;;  %p2461_p7 = scmp.lt.u32.totalorder %s2698_s14, %s2819_s0 }
  0x37   : > { %p2458_p3 = pnand %p2457_p0, %p2456_p13  ;;  %p2462_p9 = scmp.lt.u32.totalorder %s2460_s19, %s2455_s16 }
  0x38   : > { %p2464_p1 = scmp.lt.u32.totalorder %s2455_s16, %s2698_s14 }
  0x39   : > { %p2459_p5 = pneg %p2458_p3  ;;  %p2463_p2 = por %p2462_p9, %p2461_p7 }
  0x3b   : > { %p2465_p4 = por %p2464_p1, %p2463_p2 }
  0x3d   : > { %p2466_p6 = pnand %p2465_p4, %p2459_p5 }
  0x3f   : > { %2469 = shalt.err (!%p2466_p6)
}
  0x40   : > { %s2470_s10 = scalar_lea.vmem %s2704_s8, 1408  ;;  %s2560_s12 = smov [#allocation3]  }
  0x41   : > { %p2471_p8 = scmp.ne.s32.totalorder %s2704_s8, %s2470_s10  ;;  %s2475_s30 = sshll.u32 %s2560_s12, 4  ;;  %s2476_s30 = int_to_ptr.vmem [resolvable:$false] %s2475_s30 }
  0x42   : > { %s2477_s13 = scalar_lea.vmem %s2476_s30, 2816  ;;  %p2478_p3 = scmp.lt.s32.totalorder %s2704_s8, %s2476_s30 }
  0x43   : > { %p2473_p10 = pnand %p2471_p8, %p2457_p0  ;;  %p2479_p7 = scmp.lt.s32.totalorder %s2477_s13, %s2470_s10 }
  0x45   : > { %p2474_p13 = pneg %p2473_p10  ;;  %p2480_p9 = por %p2479_p7, %p2478_p3 }
  0x47   : > { %p2481_p2 = pnand %p2480_p9, %p2474_p13 }
  0x49   : > { %2484 = shalt.err (!%p2481_p2)
}
  0x4a   : > { %s2561_s7 = smov 704   ;;  %s2562_s16 = smov 44  }
  0x4b   : > { %2098 = dma.hbm_to_vmem [thread:$0]  (!%p2700_p11), %s2698_s14, 1408, %s2704_s8, %s2706_s15, %s2561_s7, %s2561_s7, %s2562_s16  }
  0x4c   : > { %p2835_p0 = scmp.ne.s32.totalorder %s2830_s27, 0 }
  0x4d   : > { %s2737_s17 = sand.u32 (!%p2835_p0), 1, %s2547_s21   ;;  %p2836_p5 = scmp.ne.s32.totalorder (!%p2835_p0), %s2828_s25, 0 }
  0x4e   : > { %224 = sbr.rel (%p2835_p0) target bundleno = 759 (0x2f7), region = 40  ;;  %s227_s19 = scalar_lea.sflag (!%p2835_p0), [#allocation4], %s2737_s17 }
  0x4f   : > { %s2082_s18 = smul.u32 (!%p2835_p0), 88, %s2737_s17 }
  0x51   : > { %s2741_s24 = scalar_lea.vmem (!%p2835_p0), [#allocation3], %s2082_s18 }
  0x55   : > { %2530 = dma.done.wait (%p2836_p5), %s227_s19, 1408  }
  0x56   : > { %2532 = vsyncadd (%p2836_p5), %s227_s19, 4294965888  ;;  %p2837_p11 = scmp.eq.s32.totalorder %s2619_s4, 0 }
  0x58   : > { %2534 = dma.done.wait (%p2837_p11), [#allocation7], 22400   ;;  %p2838_p1 = pmov %p2837_p11 }
  0x59   : > { %v2146_v1 = vld [vmem:[#allocation6 + $0x4] ss:$8 sps:$4 sm:$0xff]   ;;  %v2150_v3 = vld [vmem:[#allocation6] ss:$8 sps:$4 sm:$0xff]   ;;  %v2152_v5 = vld [vmem:[#allocation6 + $0x14] ss:$8 sps:$4 sm:$0xff]  }
  0x5a   : > { %2536 = vsyncadd (%p2838_p1), [#allocation7], 4294944896  ;;  %v2148_v2 = vld [vmem:[#allocation6 + $0x204] ss:$8 sps:$4 sm:$0xff]   ;;  %1402 = vmatprep.subr.bf16.mxu1 %v2146_v1  ;;  %v2151_v4 = vld [vmem:[#allocation6 + $0x200] ss:$8 sps:$4 sm:$0xff]  }
  0x5b   : > { %1488 = vmatprep.subr.bf16.mxu0 %v2148_v2  ;;  %1403 = vmatpush1.bf16.msra.mxu1 %v2150_v3  ;;  %v2154_v6 = vld [vmem:[#allocation6 + $0x214] ss:$8 sps:$4 sm:$0xff]   ;;  %v2156_v7 = vld [vmem:[#allocation6 + $0x10] ss:$8 sps:$4 sm:$0xff]   ;;  %v2158_v9 = vld [vmem:[#allocation6 + $0x24] ss:$8 sps:$4 sm:$0xff]  }
  0x5c   : > { %1489 = vmatpush1.bf16.msra.mxu0 %v2151_v4  ;;  %1404 = vmatprep.subr.bf16.mxu1 %v2152_v5  ;;  %v2157_v8 = vld [vmem:[#allocation6 + $0x210] ss:$8 sps:$4 sm:$0xff]   ;;  %v2160_v10 = vld [vmem:[#allocation6 + $0x224] ss:$8 sps:$4 sm:$0xff]   ;;  %v2162_v11 = vld [vmem:[#allocation6 + $0x20] ss:$8 sps:$4 sm:$0xff]  }
  0x5d   : > { %1490 = vmatprep.subr.bf16.mxu0 %v2154_v6  ;;  %v2163_v12 = vld [vmem:[#allocation6 + $0x220] ss:$8 sps:$4 sm:$0xff]   ;;  %v2164_v13 = vld [vmem:[#allocation6 + $0x34] ss:$8 sps:$4 sm:$0xff]   ;;  %v2168_v15 = vld [vmem:[#allocation6 + $0x30] ss:$8 sps:$4 sm:$0xff]  }
  0x5e   : > { %v2166_v14 = vld [vmem:[#allocation6 + $0x234] ss:$8 sps:$4 sm:$0xff]   ;;  %v2169_v16 = vld [vmem:[#allocation6 + $0x230] ss:$8 sps:$4 sm:$0xff]   ;;  %v2170_v17 = vld [vmem:[#allocation6 + $0x44] ss:$8 sps:$4 sm:$0xff]  }
  0x5f   : > { %1405 = vmatpush1.bf16.msra.mxu1 %v2156_v7  ;;  %v2172_v18 = vld [vmem:[#allocation6 + $0x244] ss:$8 sps:$4 sm:$0xff]   ;;  %v2174_v19 = vld [vmem:[#allocation6 + $0x40] ss:$8 sps:$4 sm:$0xff]   ;;  %v2176_v21 = vld [vmem:[#allocation6 + $0x54] ss:$8 sps:$4 sm:$0xff]  }
  0x60   : > { %1491 = vmatpush1.bf16.msra.mxu0 %v2157_v8  ;;  %1406 = vmatprep.subr.bf16.mxu1 %v2158_v9  ;;  %v2175_v20 = vld [vmem:[#allocation6 + $0x240] ss:$8 sps:$4 sm:$0xff]   ;;  %v2178_v22 = vld [vmem:[#allocation6 + $0x254] ss:$8 sps:$4 sm:$0xff]   ;;  %v2180_v23 = vld [vmem:[#allocation6 + $0x50] ss:$8 sps:$4 sm:$0xff]  }
  0x61   : > { %1492 = vmatprep.subr.bf16.mxu0 %v2160_v10  ;;  %v2181_v24 = vld [vmem:[#allocation6 + $0x250] ss:$8 sps:$4 sm:$0xff]   ;;  %v2182_v25 = vld [vmem:[#allocation6 + $0x64] ss:$8 sps:$4 sm:$0xff]   ;;  %v2186_v27 = vld [vmem:[#allocation6 + $0x60] ss:$8 sps:$4 sm:$0xff]  }
  0x62   : > { %v2184_v26 = vld [vmem:[#allocation6 + $0x264] ss:$8 sps:$4 sm:$0xff]   ;;  %v2187_v28 = vld [vmem:[#allocation6 + $0x260] ss:$8 sps:$4 sm:$0xff]   ;;  %v2188_v29 = vld [vmem:[#allocation6 + $0x74] ss:$8 sps:$4 sm:$0xff]  }
  0x63   : > { %1407 = vmatpush1.bf16.msra.mxu1 %v2162_v11  ;;  %v2190_v30 = vld [vmem:[#allocation6 + $0x274] ss:$8 sps:$4 sm:$0xff]   ;;  %v2192_v31 = vld [vmem:[#allocation6 + $0x70] ss:$8 sps:$4 sm:$0xff]   ;;  %v2194_v33 = vld [vmem:[#allocation6 + $0x84] ss:$8 sps:$4 sm:$0xff]  }
  0x64   : > { %1493 = vmatpush1.bf16.msra.mxu0 %v2163_v12  ;;  %1408 = vmatprep.subr.bf16.mxu1 %v2164_v13  ;;  %v2193_v32 = vld [vmem:[#allocation6 + $0x270] ss:$8 sps:$4 sm:$0xff]   ;;  %v2196_v34 = vld [vmem:[#allocation6 + $0x284] ss:$8 sps:$4 sm:$0xff]   ;;  %v2198_v35 = vld [vmem:[#allocation6 + $0x80] ss:$8 sps:$4 sm:$0xff]  }
  0x65   : > { %1494 = vmatprep.subr.bf16.mxu0 %v2166_v14  ;;  %v2199_v36 = vld [vmem:[#allocation6 + $0x280] ss:$8 sps:$4 sm:$0xff]   ;;  %v2200_v37 = vld [vmem:[#allocation6 + $0x94] ss:$8 sps:$4 sm:$0xff]   ;;  %v2204_v39 = vld [vmem:[#allocation6 + $0x90] ss:$8 sps:$4 sm:$0xff]  }
  0x66   : > { %v2202_v38 = vld [vmem:[#allocation6 + $0x294] ss:$8 sps:$4 sm:$0xff]   ;;  %v2205_v40 = vld [vmem:[#allocation6 + $0x290] ss:$8 sps:$4 sm:$0xff]   ;;  %v2206_v41 = vld [vmem:[#allocation6 + $0xa4] ss:$8 sps:$4 sm:$0xff]  }
  0x67   : > { %1409 = vmatpush1.bf16.msra.mxu1 %v2168_v15  ;;  %v2208_v42 = vld [vmem:[#allocation6 + $0x2a4] ss:$8 sps:$4 sm:$0xff]   ;;  %v2210_v43 = vld [vmem:[#allocation6 + $0xa0] ss:$8 sps:$4 sm:$0xff]   ;;  %v2212_v45 = vld [vmem:[#allocation6 + $0xb4] ss:$8 sps:$4 sm:$0xff]  }
  0x68   : > { %1495 = vmatpush1.bf16.msra.mxu0 %v2169_v16  ;;  %1410 = vmatprep.subr.bf16.mxu1 %v2170_v17  ;;  %v2211_v44 = vld [vmem:[#allocation6 + $0x2a0] ss:$8 sps:$4 sm:$0xff]   ;;  %v2214_v46 = vld [vmem:[#allocation6 + $0x2b4] ss:$8 sps:$4 sm:$0xff]   ;;  %v2216_v47 = vld [vmem:[#allocation6 + $0xb0] ss:$8 sps:$4 sm:$0xff]  }
  0x69   : > { %1496 = vmatprep.subr.bf16.mxu0 %v2172_v18  ;;  %v2217_v48 = vld [vmem:[#allocation6 + $0x2b0] ss:$8 sps:$4 sm:$0xff]   ;;  %v2218_v50 = vld [vmem:[#allocation6 + $0xc4] ss:$8 sps:$4 sm:$0xff]   ;;  %v2222_v53 = vld [vmem:[#allocation6 + $0xc0] ss:$8 sps:$4 sm:$0xff]  }
  0x6a   : > { %v2244_v49 = vld [vmem:[%s2741_s24 + $0x4] ss:$44 sps:$4 sm:$0xff]   ;;  %v2250_v52 = vld [vmem:[%s2741_s24 + $0x14] ss:$44 sps:$4 sm:$0xff]   ;;  %v2563_v11 = vmov 0   ;;  %vm1395_vm0 = vcmask 1043456  }
  0x6b   : > { %1411 = vmatpush1.bf16.msra.mxu1 %v2174_v19  ;;  %v2220_v51 = vld [vmem:[#allocation6 + $0x2c4] ss:$8 sps:$4 sm:$0xff]   ;;  %1434 = vmatprep.mubr.bf16.mxu1 %v2244_v49  ;;  %v2223_v54 = vld [vmem:[#allocation6 + $0x2c0] ss:$8 sps:$4 sm:$0xff]   ;;  %v2224_v55 = vld [vmem:[#allocation6 + $0xd4] ss:$8 sps:$4 sm:$0xff]  }
  0x6c   : > { %1497 = vmatpush1.bf16.msra.mxu0 %v2175_v20  ;;  %1412 = vmatprep.subr.bf16.mxu1 %v2176_v21  ;;  %v2226_v56 = vld [vmem:[#allocation6 + $0x2d4] ss:$8 sps:$4 sm:$0xff]   ;;  %v2228_v57 = vld [vmem:[#allocation6 + $0xd0] ss:$8 sps:$4 sm:$0xff]   ;;  %v2230_v59 = vld [vmem:[#allocation6 + $0xe4] ss:$8 sps:$4 sm:$0xff]  }
  0x6d   : > { %1498 = vmatprep.subr.bf16.mxu0 %v2178_v22  ;;  %1520 = vmatprep.mubr.bf16.mxu0 %v2250_v52  ;;  %v2229_v58 = vld [vmem:[#allocation6 + $0x2d0] ss:$8 sps:$4 sm:$0xff]   ;;  %v2232_v60 = vld [vmem:[#allocation6 + $0x2e4] ss:$8 sps:$4 sm:$0xff]   ;;  %v2234_v61 = vld [vmem:[#allocation6 + $0xe0] ss:$8 sps:$4 sm:$0xff]  }
  0x6e   : > { %v2235_v62 = vld [vmem:[#allocation6 + $0x2e0] ss:$8 sps:$4 sm:$0xff]   ;;  %v2236_v63 = vld [vmem:[#allocation6 + $0xf4] ss:$8 sps:$4 sm:$0xff]   ;;  %v2240_v1 = vld [vmem:[#allocation6 + $0xf0] ss:$8 sps:$4 sm:$0xff]   ;;  %2145 = vset.pattern.permute.xlu0 %v2563_v11 }
  0x6f   : > { %1413 = vmatpush1.bf16.msra.mxu1 %v2180_v23  ;;  %v2238_v0 = vld [vmem:[#allocation6 + $0x2f4] ss:$8 sps:$4 sm:$0xff]   ;;  %v2241_v2 = vld [vmem:[#allocation6 + $0x2f0] ss:$8 sps:$4 sm:$0xff]   ;;  %v2247_v3 = vld [vmem:[#allocation6 + $0x104] ss:$8 sps:$4 sm:$0xff]  }
  0x70   : > { %1499 = vmatpush1.bf16.msra.mxu0 %v2181_v24  ;;  %1414 = vmatprep.subr.bf16.mxu1 %v2182_v25  ;;  %v2253_v4 = vld [vmem:[#allocation6 + $0x304] ss:$8 sps:$4 sm:$0xff]   ;;  %v2242_v5 = vld [vmem:[%s2741_s24] ss:$44 sps:$4 sm:$0xff]   ;;  %vm1391_vm1 = vcmask 982016   ;;  %s2049_s8 = sshll.u32 %s2619_s4, 4 }
  0x71   : > { %1500 = vmatprep.subr.bf16.mxu0 %v2184_v26  ;;  %v2245_v6 = vld [vmem:[#allocation6 + $0x100] ss:$8 sps:$4 sm:$0xff]   ;;  %v2256_v9 = vld [vmem:[#allocation6 + $0x114] ss:$8 sps:$4 sm:$0xff]   ;;  %v2254_v12 = vld [vmem:[#allocation6 + $0x110] ss:$8 sps:$4 sm:$0xff]   ;;  %s2775_s30 = scalar_lea.hbm %s2824_s5, %s2049_s8 }
  0x72   : > { %v2248_v7 = vld [vmem:[%s2741_s24 + $0x10] ss:$44 sps:$4 sm:$0xff]   ;;  %v2259_v10 = vld [vmem:[#allocation6 + $0x314] ss:$8 sps:$4 sm:$0xff]   ;;  %s259_s15 = scalar_lea.vmem [#allocation8], %s2737_s17  ;;  %vm1760_vm2 = vcmask 122880  }
  0x73   : > { %1415 = vmatpush1.bf16.msra.mxu1 %v2186_v27  ;;  %v2251_v8 = vld [vmem:[#allocation6 + $0x300] ss:$8 sps:$4 sm:$0xff]   ;;  %v2257_v13 = vld [vmem:[#allocation6 + $0x310] ss:$8 sps:$4 sm:$0xff]   ;;  %v2262_v14 = vld [vmem:[#allocation6 + $0x124] ss:$8 sps:$4 sm:$0xff]  }
  0x74   : > { %1501 = vmatpush1.bf16.msra.mxu0 %v2187_v28  ;;  %1416 = vmatprep.subr.bf16.mxu1 %v2188_v29  ;;  %v2265_v15 = vld [vmem:[#allocation6 + $0x324] ss:$8 sps:$4 sm:$0xff]   ;;  %v2260_v16 = vld [vmem:[#allocation6 + $0x120] ss:$8 sps:$4 sm:$0xff]   ;;  %v2268_v18 = vld [vmem:[#allocation6 + $0x134] ss:$8 sps:$4 sm:$0xff]  }
  0x75   : > { %1502 = vmatprep.subr.bf16.mxu0 %v2190_v30  ;;  %v2263_v17 = vld [vmem:[#allocation6 + $0x320] ss:$8 sps:$4 sm:$0xff]   ;;  %v2271_v19 = vld [vmem:[#allocation6 + $0x334] ss:$8 sps:$4 sm:$0xff]   ;;  %v2266_v20 = vld [vmem:[#allocation6 + $0x130] ss:$8 sps:$4 sm:$0xff]  }
  0x76   : > { %v2269_v21 = vld [vmem:[#allocation6 + $0x330] ss:$8 sps:$4 sm:$0xff]   ;;  %v2274_v22 = vld [vmem:[#allocation6 + $0x144] ss:$8 sps:$4 sm:$0xff]   ;;  %v2272_v24 = vld [vmem:[#allocation6 + $0x140] ss:$8 sps:$4 sm:$0xff]  }
  0x77   : > { %1417 = vmatpush1.bf16.msra.mxu1 %v2192_v31  ;;  %v2277_v23 = vld [vmem:[#allocation6 + $0x344] ss:$8 sps:$4 sm:$0xff]   ;;  %v2275_v25 = vld [vmem:[#allocation6 + $0x340] ss:$8 sps:$4 sm:$0xff]   ;;  %v2280_v26 = vld [vmem:[#allocation6 + $0x154] ss:$8 sps:$4 sm:$0xff]  }
  0x78   : > { %1503 = vmatpush1.bf16.msra.mxu0 %v2193_v32  ;;  %1418 = vmatprep.subr.bf16.mxu1 %v2194_v33  ;;  %v2283_v27 = vld [vmem:[#allocation6 + $0x354] ss:$8 sps:$4 sm:$0xff]   ;;  %v2278_v28 = vld [vmem:[#allocation6 + $0x150] ss:$8 sps:$4 sm:$0xff]   ;;  %v2286_v30 = vld [vmem:[#allocation6 + $0x164] ss:$8 sps:$4 sm:$0xff]  }
  0x79   : > { %1504 = vmatprep.subr.bf16.mxu0 %v2196_v34  ;;  %v2281_v29 = vld [vmem:[#allocation6 + $0x350] ss:$8 sps:$4 sm:$0xff]   ;;  %v2289_v31 = vld [vmem:[#allocation6 + $0x364] ss:$8 sps:$4 sm:$0xff]   ;;  %v2284_v32 = vld [vmem:[#allocation6 + $0x160] ss:$8 sps:$4 sm:$0xff]  }
  0x7a   : > { %v2287_v33 = vld [vmem:[#allocation6 + $0x360] ss:$8 sps:$4 sm:$0xff]   ;;  %v2292_v34 = vld [vmem:[#allocation6 + $0x174] ss:$8 sps:$4 sm:$0xff]   ;;  %v2313_v49 = vld [vmem:[#allocation6 + $0x3a4] ss:$8 sps:$4 sm:$0xff]  }
  0x7b   : > { %1419 = vmatpush1.bf16.msra.mxu1 %v2198_v35  ;;  %v2295_v35 = vld [vmem:[#allocation6 + $0x374] ss:$8 sps:$4 sm:$0xff]   ;;  %s1775_s11 = sshll.u32 %s259_s15, 4  ;;  %s1763_s13 = scalar_lea.sflag [#allocation5], %s2737_s17  ;;  %s2777_s11 = int_to_ptr.vmem [resolvable:$true] %s1775_s11 }
  0x7c   : > { %1505 = vmatpush1.bf16.msra.mxu0 %v2199_v36  ;;  %1420 = vmatprep.subr.bf16.mxu1 %v2200_v37  ;;  %v2346_v36 = vld [vmem:[%s2741_s24 + $0xc] ss:$44 sps:$4 sm:$0xff]   ;;  %v2349_v37 = vld [vmem:[%s2741_s24 + $0x1c] ss:$44 sps:$4 sm:$0xff]   ;;  %s2485_s7 = scalar_lea.vmem %s2777_s11, 16  ;;  %s2564_s4 = smov [#allocation8]  }
  0x7d   : > { %1506 = vmatprep.subr.bf16.mxu0 %v2202_v38  ;;  %v2290_v38 = vld [vmem:[#allocation6 + $0x170] ss:$8 sps:$4 sm:$0xff]   ;;  %v2316_v52 = vld [vmem:[#allocation6 + $0x1b4] ss:$8 sps:$4 sm:$0xff]   ;;  %p2486_p4 = scmp.ne.s32.totalorder %s2777_s11, %s2485_s7  ;;  %s2489_s16 = sshll.u32 %s2564_s4, 4  ;;  %s2490_s16 = int_to_ptr.vmem [resolvable:$false] %s2489_s16 }
  0x7e   : > { %s2491_s18 = scalar_lea.vmem %s2490_s16, 32  ;;  %p2492_p10 = scmp.lt.s32.totalorder %s2777_s11, %s2490_s16 }
  0x7f   : > { %1421 = vmatpush1.bf16.msra.mxu1 %v2204_v39  ;;  %v2293_v39 = vld [vmem:[#allocation6 + $0x370] ss:$8 sps:$4 sm:$0xff]   ;;  %p2487_p6 = pnand %p2486_p4, %p2689_p12  ;;  %p2493_p13 = scmp.lt.s32.totalorder %s2491_s18, %s2485_s7 }
  0x80   : > { %1507 = vmatpush1.bf16.msra.mxu0 %v2205_v40  ;;  %1422 = vmatprep.subr.bf16.mxu1 %v2206_v41  ;;  %v2298_v40 = vld [vmem:[#allocation6 + $0x184] ss:$8 sps:$4 sm:$0xff]  }
  0x81   : > { %1508 = vmatprep.subr.bf16.mxu0 %v2208_v42  ;;  %v2301_v41 = vld [vmem:[#allocation6 + $0x384] ss:$8 sps:$4 sm:$0xff]   ;;  %v2296_v42 = vld [vmem:[#allocation6 + $0x180] ss:$8 sps:$4 sm:$0xff]   ;;  %p2488_p8 = pneg %p2487_p6  ;;  %p2494_p3 = por %p2493_p13, %p2492_p10 }
  0x83   : > { %1423 = vmatpush1.bf16.msra.mxu1 %v2210_v43  ;;  %v2299_v43 = vld [vmem:[#allocation6 + $0x380] ss:$8 sps:$4 sm:$0xff]   ;;  %p2495_p7 = pnand %p2494_p3, %p2488_p8 }
  0x84   : > { %1509 = vmatpush1.bf16.msra.mxu0 %v2211_v44  ;;  %1424 = vmatprep.subr.bf16.mxu1 %v2212_v45  ;;  %v2304_v44 = vld [vmem:[#allocation6 + $0x194] ss:$8 sps:$4 sm:$0xff]  }
  0x85   : > { %1510 = vmatprep.subr.bf16.mxu0 %v2214_v46  ;;  %v2307_v45 = vld [vmem:[#allocation6 + $0x394] ss:$8 sps:$4 sm:$0xff]   ;;  %v2302_v46 = vld [vmem:[#allocation6 + $0x190] ss:$8 sps:$4 sm:$0xff]  }
  0x87   : > { %1425 = vmatpush1.bf16.msra.mxu1 %v2216_v47  ;;  %v2305_v47 = vld [vmem:[#allocation6 + $0x390] ss:$8 sps:$4 sm:$0xff]  }
  0x88   : > { %1511 = vmatpush1.bf16.msra.mxu0 %v2217_v48  ;;  %1426 = vmatprep.subr.bf16.mxu1 %v2218_v50  ;;  %v2310_v48 = vld [vmem:[#allocation6 + $0x1a4] ss:$8 sps:$4 sm:$0xff]   ;;  %v2308_v50 = vld [vmem:[#allocation6 + $0x1a0] ss:$8 sps:$4 sm:$0xff]  }
  0x89   : > { %1512 = vmatprep.subr.bf16.mxu0 %v2220_v51  ;;  %v2311_v51 = vld [vmem:[#allocation6 + $0x3a0] ss:$8 sps:$4 sm:$0xff]  }
  0x8b   : > { %1427 = vmatpush1.bf16.msra.mxu1 %v2222_v53  ;;  %v2319_v53 = vld [vmem:[#allocation6 + $0x3b4] ss:$8 sps:$4 sm:$0xff]  }
  0x8c   : > { %1513 = vmatpush1.bf16.msra.mxu0 %v2223_v54  ;;  %1428 = vmatprep.subr.bf16.mxu1 %v2224_v55  ;;  %v2314_v54 = vld [vmem:[#allocation6 + $0x1b0] ss:$8 sps:$4 sm:$0xff]  }
  0x8d   : > { %1514 = vmatprep.subr.bf16.mxu0 %v2226_v56  ;;  %v2317_v55 = vld [vmem:[#allocation6 + $0x3b0] ss:$8 sps:$4 sm:$0xff]   ;;  %v2322_v56 = vld [vmem:[#allocation6 + $0x1c4] ss:$8 sps:$4 sm:$0xff]  }
  0x8f   : > { %1429 = vmatpush1.bf16.msra.mxu1 %v2228_v57  ;;  %v2325_v57 = vld [vmem:[#allocation6 + $0x3c4] ss:$8 sps:$4 sm:$0xff]  }
  0x90   : > { %1515 = vmatpush1.bf16.msra.mxu0 %v2229_v58  ;;  %1430 = vmatprep.subr.bf16.mxu1 %v2230_v59  ;;  %v2320_v58 = vld [vmem:[#allocation6 + $0x1c0] ss:$8 sps:$4 sm:$0xff]  }
  0x91   : > { %1516 = vmatprep.subr.bf16.mxu0 %v2232_v60  ;;  %v2323_v59 = vld [vmem:[#allocation6 + $0x3c0] ss:$8 sps:$4 sm:$0xff]   ;;  %v2328_v60 = vld [vmem:[#allocation6 + $0x1d4] ss:$8 sps:$4 sm:$0xff]  }
  0x93   : > { %1431 = vmatpush1.bf16.msra.mxu1 %v2234_v61  ;;  %v2331_v61 = vld [vmem:[#allocation6 + $0x3d4] ss:$8 sps:$4 sm:$0xff]  }
  0x94   : > { %1517 = vmatpush1.bf16.msra.mxu0 %v2235_v62  ;;  %1432 = vmatprep.subr.bf16.mxu1 %v2236_v63  ;;  %v2326_v62 = vld [vmem:[#allocation6 + $0x1d0] ss:$8 sps:$4 sm:$0xff]  }
  0x95   : > { %1518 = vmatprep.subr.bf16.mxu0 %v2238_v0  ;;  %v2329_v63 = vld [vmem:[#allocation6 + $0x3d0] ss:$8 sps:$4 sm:$0xff]   ;;  %v2334_v0 = vld [vmem:[#allocation6 + $0x1e4] ss:$8 sps:$4 sm:$0xff]  }
  0x97   : > { %1433 = vmatpush1.bf16.msra.mxu1 %v2240_v1  ;;  %v2337_v1 = vld [vmem:[#allocation6 + $0x3e4] ss:$8 sps:$4 sm:$0xff]  }
  0x98   : > { %1519 = vmatpush1.bf16.msra.mxu0 %v2241_v2  ;;  %1445 = vmatprep.subr.bf16.mxu1 %v2247_v3  ;;  %v2332_v2 = vld [vmem:[#allocation6 + $0x1e0] ss:$8 sps:$4 sm:$0xff]  }
  0x99   : > { %1531 = vmatprep.subr.bf16.mxu0 %v2253_v4  ;;  %v2335_v3 = vld [vmem:[#allocation6 + $0x3e0] ss:$8 sps:$4 sm:$0xff]   ;;  %v2340_v4 = vld [vmem:[#allocation6 + $0x1f4] ss:$8 sps:$4 sm:$0xff]  }
  0x9a   : > { %1435 = vmatmul.mubr.bf16.vlgmr.msra.gmra.mrb[0].mxu1 %v2242_v5  ;;  %v2343_v5 = vld [vmem:[#allocation6 + $0x3f4] ss:$8 sps:$4 sm:$0xff]  }
  0x9b   : > { %1521 = vmatmul.mubr.bf16.vlgmr.msra.gmra.mrb[0].mxu0 %v2248_v7  ;;  %1446 = vmatpush1.bf16.msra.mxu1 %v2245_v6  ;;  %v2338_v6 = vld [vmem:[#allocation6 + $0x1f0] ss:$8 sps:$4 sm:$0xff]  }
  0x9c   : > { %1532 = vmatpush1.bf16.msra.mxu0 %v2251_v8  ;;  %1447 = vmatprep.subr.bf16.mxu1 %v2256_v9  ;;  %v2341_v7 = vld [vmem:[#allocation6 + $0x3f0] ss:$8 sps:$4 sm:$0xff]   ;;  %v2352_v8 = vld [vmem:[#allocation6 + $0x404] ss:$8 sps:$4 sm:$0xff]  }
  0x9d   : > { %1533 = vmatprep.subr.bf16.mxu0 %v2259_v10  ;;  %1477 = vmatprep.mubr.bf16.mxu1 %v2346_v36  ;;  %v2376_v9 = vld [vmem:[#allocation6 + $0x504] ss:$8 sps:$4 sm:$0xff]  }
  0x9e   : > { %1563 = vmatprep.mubr.bf16.mxu0 %v2349_v37  ;;  %v2344_v10 = vld [vmem:[%s2741_s24 + $0x8] ss:$44 sps:$4 sm:$0xff]  }
  0x9f   : > { %1448 = vmatpush1.bf16.msra.mxu1 %v2254_v12  ;;  %v2347_v12 = vld [vmem:[%s2741_s24 + $0x18] ss:$44 sps:$4 sm:$0xff]  }
  0xa0   : > { %1534 = vmatpush1.bf16.msra.mxu0 %v2257_v13  ;;  %1449 = vmatprep.subr.bf16.mxu1 %v2262_v14  ;;  %v2350_v13 = vld [vmem:[#allocation6 + $0x400] ss:$8 sps:$4 sm:$0xff]   ;;  %v2412_v36 = vld [vmem:[#allocation6 + $0x564] ss:$8 sps:$4 sm:$0xff]   ;;  %v448_v37 = vld [vmem:[#allocation6 + $0x570] sm:$0xff] }
  0xa1   : > { %1535 = vmatprep.subr.bf16.mxu0 %v2265_v15  ;;  %v2374_v14 = vld [vmem:[#allocation6 + $0x500] ss:$8 sps:$4 sm:$0xff]   ;;  %v2355_v15 = vld [vmem:[#allocation6 + $0x414] ss:$8 sps:$4 sm:$0xff]  }
  0xa3   : > { %1450 = vmatpush1.bf16.msra.mxu1 %v2260_v16  ;;  %v2382_v16 = vld [vmem:[#allocation6 + $0x514] ss:$8 sps:$4 sm:$0xff]  }
  0xa4   : > { %1536 = vmatpush1.bf16.msra.mxu0 %v2263_v17  ;;  %1451 = vmatprep.subr.bf16.mxu1 %v2268_v18  ;;  %v2423_v17 = vld [vmem:[%s2741_s24 + $0x24] ss:$44 sps:$4 sm:$0xff]  }
  0xa5   : > { %1537 = vmatprep.subr.bf16.mxu0 %v2271_v19  ;;  %v2353_v18 = vld [vmem:[#allocation6 + $0x410] ss:$8 sps:$4 sm:$0xff]  }
  0xa6   : > { %v2380_v19 = vld [vmem:[#allocation6 + $0x510] ss:$8 sps:$4 sm:$0xff]  }
  0xa7   : > { %1452 = vmatpush1.bf16.msra.mxu1 %v2266_v20  ;;  %v2358_v20 = vld [vmem:[#allocation6 + $0x424] ss:$8 sps:$4 sm:$0xff]  }
  0xa8   : > { %1538 = vmatpush1.bf16.msra.mxu0 %v2269_v21  ;;  %1453 = vmatprep.subr.bf16.mxu1 %v2274_v22  ;;  %v2388_v21 = vld [vmem:[#allocation6 + $0x524] ss:$8 sps:$4 sm:$0xff]   ;;  %v2356_v22 = vld [vmem:[#allocation6 + $0x420] ss:$8 sps:$4 sm:$0xff]  }
  0xa9   : > { %1539 = vmatprep.subr.bf16.mxu0 %v2277_v23  ;;  %v2386_v23 = vld [vmem:[#allocation6 + $0x520] ss:$8 sps:$4 sm:$0xff]  }
  0xab   : > { %1454 = vmatpush1.bf16.msra.mxu1 %v2272_v24  ;;  %v2361_v24 = vld [vmem:[#allocation6 + $0x434] ss:$8 sps:$4 sm:$0xff]  }
  0xac   : > { %1540 = vmatpush1.bf16.msra.mxu0 %v2275_v25  ;;  %1455 = vmatprep.subr.bf16.mxu1 %v2280_v26  ;;  %v2394_v25 = vld [vmem:[#allocation6 + $0x534] ss:$8 sps:$4 sm:$0xff]   ;;  %v2359_v26 = vld [vmem:[#allocation6 + $0x430] ss:$8 sps:$4 sm:$0xff]  }
  0xad   : > { %1541 = vmatprep.subr.bf16.mxu0 %v2283_v27  ;;  %v2392_v27 = vld [vmem:[#allocation6 + $0x530] ss:$8 sps:$4 sm:$0xff]  }
  0xaf   : > { %1456 = vmatpush1.bf16.msra.mxu1 %v2278_v28  ;;  %v2364_v28 = vld [vmem:[#allocation6 + $0x444] ss:$8 sps:$4 sm:$0xff]  }
  0xb0   : > { %1542 = vmatpush1.bf16.msra.mxu0 %v2281_v29  ;;  %1457 = vmatprep.subr.bf16.mxu1 %v2286_v30  ;;  %v2400_v29 = vld [vmem:[#allocation6 + $0x544] ss:$8 sps:$4 sm:$0xff]   ;;  %v2362_v30 = vld [vmem:[#allocation6 + $0x440] ss:$8 sps:$4 sm:$0xff]  }
  0xb1   : > { %1543 = vmatprep.subr.bf16.mxu0 %v2289_v31  ;;  %v2367_v31 = vld [vmem:[#allocation6 + $0x454] ss:$8 sps:$4 sm:$0xff]  }
  0xb3   : > { %1458 = vmatpush1.bf16.msra.mxu1 %v2284_v32  ;;  %v2406_v32 = vld [vmem:[#allocation6 + $0x554] ss:$8 sps:$4 sm:$0xff]  }
  0xb4   : > { %1544 = vmatpush1.bf16.msra.mxu0 %v2287_v33  ;;  %1459 = vmatprep.subr.bf16.mxu1 %v2292_v34  ;;  %v2365_v33 = vld [vmem:[#allocation6 + $0x450] ss:$8 sps:$4 sm:$0xff]  }
  0xb5   : > { %1545 = vmatprep.subr.bf16.mxu0 %v2295_v35  ;;  %v2404_v34 = vld [vmem:[#allocation6 + $0x550] ss:$8 sps:$4 sm:$0xff]   ;;  %v2370_v35 = vld [vmem:[#allocation6 + $0x464] ss:$8 sps:$4 sm:$0xff]  }
  0xb7   : > { %1460 = vmatpush1.bf16.msra.mxu1 %v2290_v38  ;;  %v2368_v38 = vld [vmem:[#allocation6 + $0x460] ss:$8 sps:$4 sm:$0xff]  }
  0xb8   : > { %1546 = vmatpush1.bf16.msra.mxu0 %v2293_v39  ;;  %1461 = vmatprep.subr.bf16.mxu1 %v2298_v40  ;;  %v2410_v39 = vld [vmem:[#allocation6 + $0x560] ss:$8 sps:$4 sm:$0xff]   ;;  %v2373_v40 = vld [vmem:[#allocation6 + $0x474] ss:$8 sps:$4 sm:$0xff]  }
  0xb9   : > { %1547 = vmatprep.subr.bf16.mxu0 %v2301_v41  ;;  %v2046_v41 = vcombine.high %v448_v37, %v448_v37 }
  0xbb   : > { %1462 = vmatpush1.bf16.msra.mxu1 %v2296_v42  ;;  %v2045_v42 = vcombine.low %v448_v37, %v448_v37 }
  0xbc   : > { %1548 = vmatpush1.bf16.msra.mxu0 %v2299_v43  ;;  %1463 = vmatprep.subr.bf16.mxu1 %v2304_v44  ;;  %v2371_v43 = vld [vmem:[#allocation6 + $0x470] ss:$8 sps:$4 sm:$0xff]   ;;  %v2379_v44 = vld [vmem:[#allocation6 + $0x484] ss:$8 sps:$4 sm:$0xff]  }
  0xbd   : > { %1549 = vmatprep.subr.bf16.mxu0 %v2307_v45  ;;  %v1397_v45 = vsel %vm1395_vm0, %v2045_v42, 0 }
  0xbf   : > { %1464 = vmatpush1.bf16.msra.mxu1 %v2302_v46  ;;  %v2424_v46 = vld [vmem:[%s2741_s24 + $0x28] ss:$44 sps:$4 sm:$0xff]  }
  0xc0   : > { %1550 = vmatpush1.bf16.msra.mxu0 %v2305_v47  ;;  %1465 = vmatprep.subr.bf16.mxu1 %v2310_v48  ;;  %v2377_v47 = vld [vmem:[#allocation6 + $0x480] ss:$8 sps:$4 sm:$0xff]   ;;  %v2385_v48 = vld [vmem:[#allocation6 + $0x494] ss:$8 sps:$4 sm:$0xff]  }
  0xc1   : > { %1551 = vmatprep.subr.bf16.mxu0 %v2313_v49  ;;  %v2383_v49 = vld [vmem:[#allocation6 + $0x490] ss:$8 sps:$4 sm:$0xff]  }
  0xc3   : > { %1466 = vmatpush1.bf16.msra.mxu1 %v2308_v50  ;;  %v2391_v50 = vld [vmem:[#allocation6 + $0x4a4] ss:$8 sps:$4 sm:$0xff]  }
  0xc4   : > { %1552 = vmatpush1.bf16.msra.mxu0 %v2311_v51  ;;  %1467 = vmatprep.subr.bf16.mxu1 %v2316_v52  ;;  %v2389_v51 = vld [vmem:[#allocation6 + $0x4a0] ss:$8 sps:$4 sm:$0xff]   ;;  %v2397_v52 = vld [vmem:[#allocation6 + $0x4b4] ss:$8 sps:$4 sm:$0xff]  }
  0xc5   : > { %1553 = vmatprep.subr.bf16.mxu0 %v2319_v53  ;;  %v2395_v53 = vld [vmem:[#allocation6 + $0x4b0] ss:$8 sps:$4 sm:$0xff]  }
  0xc7   : > { %1468 = vmatpush1.bf16.msra.mxu1 %v2314_v54  ;;  %v2403_v54 = vld [vmem:[#allocation6 + $0x4c4] ss:$8 sps:$4 sm:$0xff]  }
  0xc8   : > { %1554 = vmatpush1.bf16.msra.mxu0 %v2317_v55  ;;  %1469 = vmatprep.subr.bf16.mxu1 %v2322_v56  ;;  %v2401_v55 = vld [vmem:[#allocation6 + $0x4c0] ss:$8 sps:$4 sm:$0xff]   ;;  %v2409_v56 = vld [vmem:[#allocation6 + $0x4d4] ss:$8 sps:$4 sm:$0xff]  }
  0xc9   : > { %1555 = vmatprep.subr.bf16.mxu0 %v2325_v57  ;;  %v2407_v57 = vld [vmem:[#allocation6 + $0x4d0] ss:$8 sps:$4 sm:$0xff]  }
  0xcb   : > { %1470 = vmatpush1.bf16.msra.mxu1 %v2320_v58  ;;  %v2415_v58 = vld [vmem:[#allocation6 + $0x4e4] ss:$8 sps:$4 sm:$0xff]  }
  0xcc   : > { %1556 = vmatpush1.bf16.msra.mxu0 %v2323_v59  ;;  %1471 = vmatprep.subr.bf16.mxu1 %v2328_v60  ;;  %v2413_v59 = vld [vmem:[#allocation6 + $0x4e0] ss:$8 sps:$4 sm:$0xff]   ;;  %v2419_v60 = vld [vmem:[#allocation6 + $0x4f4] ss:$8 sps:$4 sm:$0xff]  }
  0xcd   : > { %1557 = vmatprep.subr.bf16.mxu0 %v2331_v61  ;;  %v2417_v61 = vld [vmem:[#allocation6 + $0x4f0] ss:$8 sps:$4 sm:$0xff]  }
  0xcf   : > { %1472 = vmatpush1.bf16.msra.mxu1 %v2326_v62  ;;  %v2421_v62 = vld [vmem:[%s2741_s24 + $0x20] ss:$44 sps:$4 sm:$0xff]  }
  0xd0   : > { %1558 = vmatpush1.bf16.msra.mxu0 %v2329_v63  ;;  %1473 = vmatprep.subr.bf16.mxu1 %v2334_v0  ;;  %v451_v63 = vlaneseq }
  0xd1   : > { %1559 = vmatprep.subr.bf16.mxu0 %v2337_v1 }
  0xd2   : > { %v452_v0 = vshrl.u32 %v451_v63, 7 }
  0xd3   : > { %1474 = vmatpush1.bf16.msra.mxu1 %v2332_v2  ;;  %v1664_v2 = vld [vmem:[%s2822_s3] sm:$0x3] }
  0xd4   : > { %1560 = vmatpush1.bf16.msra.mxu0 %v2335_v3  ;;  %1475 = vmatprep.subr.bf16.mxu1 %v2340_v4  ;;  %v457_v1 = vsub.s32 1, %v452_v0  ;;  %v1665_v4 = vld [vmem:[#allocation2] sm:$0x1] }
  0xd5   : > { %1561 = vmatprep.subr.bf16.mxu0 %v2343_v5  ;;  %1668 = vperm.xlu0 %2145, %v1665_v4  }
  0xd6   : > { %v1683_v3 = vrot.slane %v1664_v2, %v457_v1 }
  0xd7   : > { %1476 = vmatpush1.bf16.msra.mxu1 %v2338_v6 }
  0xd8   : > { %1562 = vmatpush1.bf16.msra.mxu0 %v2341_v7  ;;  %1617 = vmatprep.subr.bf16.mxu1 %v2376_v9 }
  0xd9   : > { %1574 = vmatprep.subr.bf16.mxu0 %v2352_v8 }
  0xda   : > { %1478 = vmatmul.mubr.bf16.vlgmr.msra.gmra.mrb[0].mxu1 %v2344_v10 }
  0xdb   : > { %1564 = vmatmul.mubr.bf16.vlgmr.msra.gmra.mrb[0].mxu0 %v2347_v12  ;;  %1618 = vmatpush1.bf16.msra.mxu1 %v2374_v14  ;;  %v453_v14 = vsub.s32 0, %v452_v0 }
  0xdc   : > { %1575 = vmatpush1.bf16.msra.mxu0 %v2350_v13  ;;  %1619 = vmatprep.subr.bf16.mxu1 %v2382_v16 }
  0xdd   : > { %1576 = vmatprep.subr.bf16.mxu0 %v2355_v15  ;;  %1649 = vmatprep.mubr.bf16.mxu1 %v2563_v11  ;;  %v2398_v11 = vld [vmem:[#allocation6 + $0x540] ss:$8 sps:$4 sm:$0xff]   ;;  %v449_v15 = vld [vmem:[%s2821_s2] sm:$0x3] }
  0xde   : > { %1606 = vmatprep.mubr.bf16.mxu0 %v2423_v17  ;;  %v454_v16 = vrot.slane %v449_v15, %v453_v14  ;;  %v458_v17 = vrot.slane %v449_v15, %v457_v1 }
  0xdf   : > { %1620 = vmatpush1.bf16.msra.mxu1 %v2380_v19 }
  0xe0   : > { %1577 = vmatpush1.bf16.msra.mxu0 %v2353_v18  ;;  %1621 = vmatprep.subr.bf16.mxu1 %v2388_v21 }
  0xe1   : > { %1578 = vmatprep.subr.bf16.mxu0 %v2358_v20 }
  0xe3   : > { %1622 = vmatpush1.bf16.msra.mxu1 %v2386_v23 }
  0xe4   : > { %1579 = vmatpush1.bf16.msra.mxu0 %v2356_v22  ;;  %1623 = vmatprep.subr.bf16.mxu1 %v2394_v25 }
  0xe5   : > { %1580 = vmatprep.subr.bf16.mxu0 %v2361_v24 }
  0xe7   : > { %1624 = vmatpush1.bf16.msra.mxu1 %v2392_v27 }
  0xe8   : > { %1581 = vmatpush1.bf16.msra.mxu0 %v2359_v26  ;;  %1625 = vmatprep.subr.bf16.mxu1 %v2400_v29 }
  0xe9   : > { %1582 = vmatprep.subr.bf16.mxu0 %v2364_v28 }
  0xeb   : > { %1626 = vmatpush1.bf16.msra.mxu1 %v2398_v11 }
  0xec   : > { %1583 = vmatpush1.bf16.msra.mxu0 %v2362_v30  ;;  %1627 = vmatprep.subr.bf16.mxu1 %v2406_v32 }
  0xed   : > { %1584 = vmatprep.subr.bf16.mxu0 %v2367_v31 }
  0xef   : > { %1628 = vmatpush1.bf16.msra.mxu1 %v2404_v34 }
  0xf0   : > { %1585 = vmatpush1.bf16.msra.mxu0 %v2365_v33  ;;  %1629 = vmatprep.subr.bf16.mxu1 %v2412_v36 }
  0xf1   : > { %1586 = vmatprep.subr.bf16.mxu0 %v2370_v35 }
  0xf3   : > { %1630 = vmatpush1.bf16.msra.mxu1 %v2410_v39  ;;  %v1679_v39 = vrot.slane %v1664_v2, %v453_v14 }
  0xf4   : > { %1587 = vmatpush1.bf16.msra.mxu0 %v2368_v38  ;;  %2047 = vmatprep.subr.msk.bf16.mxu1 %vm1395_vm0, %v2046_v41 }
  0xf5   : > { %1588 = vmatprep.subr.bf16.mxu0 %v2373_v40 }
  0xf7   : > { %1632 = vmatpush1.bf16.msra.mxu1 %v1397_v45 }
  0xf8   : > { %1589 = vmatpush1.bf16.msra.mxu0 %v2371_v43 }
  0xf9   : > { %1590 = vmatprep.subr.bf16.mxu0 %v2379_v44 }
  0xfa   : > { %2048 = vmatmul.mubr.msk.bf16.vlgmr.msra.gmra.mrb[4].mxu1 %vm1391_vm1, %v2424_v46 }
  0xfb   : > { %1750 = vmatprep.mubr.f32.mxu1 %v1683_v3 }
  0xfc   : > { %1591 = vmatpush1.bf16.msra.mxu0 %v2377_v47 }
  0xfd   : > { %1592 = vmatprep.subr.bf16.mxu0 %v2385_v48 }
 0x100   : > { %1593 = vmatpush1.bf16.msra.mxu0 %v2383_v49 }
 0x101   : > { %1594 = vmatprep.subr.bf16.mxu0 %v2391_v50 }
 0x104   : > { %1595 = vmatpush1.bf16.msra.mxu0 %v2389_v51 }
 0x105   : > { %1596 = vmatprep.subr.bf16.mxu0 %v2397_v52 }
 0x108   : > { %1597 = vmatpush1.bf16.msra.mxu0 %v2395_v53 }
 0x109   : > { %1598 = vmatprep.subr.bf16.mxu0 %v2403_v54 }
 0x10c   : > { %1599 = vmatpush1.bf16.msra.mxu0 %v2401_v55 }
 0x10d   : > { %1600 = vmatprep.subr.bf16.mxu0 %v2409_v56 }
 0x110   : > { %1601 = vmatpush1.bf16.msra.mxu0 %v2407_v57 }
 0x111   : > { %1602 = vmatprep.subr.bf16.mxu0 %v2415_v58 }
 0x114   : > { %1603 = vmatpush1.bf16.msra.mxu0 %v2413_v59 }
 0x115   : > { %1604 = vmatprep.subr.bf16.mxu0 %v2419_v60 }
 0x118   : > { %1605 = vmatpush1.bf16.msra.mxu0 %v2417_v61 }
 0x11b   : > { %1607 = vmatmul.mubr.bf16.vlgmr.msra.gmra.mrb[0].mxu0 %v2421_v62 }
 0x154   : > { %v1669_v40 = vpop.permute.xlu0 %1668 }
 0x155   : > { %v1674_v41 = vrot.slane %v1669_v40, %v453_v14 }
 0x1ad   : > { %v1479_v5 = vpop.f32.mrb[0].mxu1 }
 0x1ae   : > { %v1481_v6 = vpop.f32.mrb[1].mxu1  ;;  %v2056_v18 = vadd.f32 %v1479_v5, %v454_v16 }
 0x1af   : > { %v1483_v7 = vpop.f32.mrb[2].mxu1  ;;  %v2059_v19 = vadd.f32 %v1481_v6, %v458_v17 }
 0x1b0   : > { %v1485_v8 = vpop.f32.mrb[3].mxu1  ;;  %v2062_v21 = vadd.f32 %v1483_v7, %v454_v16 }
 0x1b1   : > { %v2065_v24 = vadd.f32 %v1485_v8, %v458_v17 }
 0x1cd   : > { %v1651_v9 = vpop.f32.mrb[4].mxu1 }
 0x1ce   : > { %v1653_v10 = vpop.f32.mrb[5].mxu1 }
 0x1cf   : > { %v1655_v12 = vpop.f32.mrb[6].mxu1 }
 0x1d0   : > { %v1657_v13 = vpop.f32.mrb[7].mxu1 }
 0x1ee   : > { %v1608_v20 = vpop.f32.mrb[0].mxu0 }
 0x1ef   : > { %v2057_v22 = vadd.f32 %v2056_v18, %v1608_v20  ;;  %v1610_v23 = vpop.f32.mrb[1].mxu0 }
 0x1f0   : > { %v2060_v25 = vadd.f32 %v2059_v19, %v1610_v23  ;;  %v1612_v26 = vpop.f32.mrb[2].mxu0 }
 0x1f1   : > { %v2058_v27 = vadd.f32 %v2057_v22, %v1651_v9  ;;  %v2063_v28 = vadd.f32 %v2062_v21, %v1612_v26  ;;  %v1614_v29 = vpop.f32.mrb[3].mxu0 }
 0x1f2   : > { %v2061_v30 = vadd.f32 %v2060_v25, %v1653_v10  ;;  %v2066_v11 = vadd.f32 %v2065_v24, %v1614_v29 }
 0x1f3   : > { %v2064_v31 = vadd.f32 %v2063_v28, %v1655_v12  ;;  %v1660_v33 = vmax.f32 %v2058_v27, 0.0 }
 0x1f4   : > { %v2067_v32 = vadd.f32 %v2066_v11, %v1657_v13  ;;  %v1661_v35 = vmax.f32 %v2061_v30, 0.0 }
 0x1f5   : > { %v1662_v34 = vmax.f32 %v2064_v31, 0.0 }
 0x1f6   : > { %v1663_v36 = vmax.f32 %v2067_v32, 0.0 }
 0x1f7   : > { %v2054_v37 = vpack.c.bf16 %v1662_v34, %v1660_v33 }
 0x1f8   : > { %v2052_v38 = vpack.c.bf16 %v1663_v36, %v1661_v35 }
 0x1fa   : > { %2053 = vmatprep.subr.bf16.mxu1 %v2052_v38 }
 0x1fb   : > { %2055 = vmatpush1.bf16.xpose.msra.mxu1 %v2054_v37 }
 0x202   : > { %1751 = vmatmul.mubr.f32.vlgmr.msra.gmra.mrb[8].mxu1 %v1679_v39 }
 0x2d5   : > { %v1752_v42 = vpop.f32.mrb[8].mxu1 }
 0x2d6   : > { %v1753_v43 = vadd.f32 %v1752_v42, %v1674_v41  ;;  %v1754_v44 = vpop.f32.mrb[9].mxu1 }
 0x2d8   : > { %v1756_v45 = vmul.f32 0.5, %v1753_v43 }
 0x2da   : > { %2425 = vtanh.f32 %v1756_v45 }
 0x2e4   : > { %v2426_v46 = vpop.eup %2425 }
 0x2e5   : > { %v1758_v47 = vadd.f32 1.0, %v2426_v46 }
 0x2e7   : > { %v1759_v48 = vmul.f32 0.5, %v1758_v47 }
 0x2e9   : > { %1761 = vst.msk [vmem:[%s259_s15] sm:$0x1] %vm1760_vm2, %v1759_v48 }
 0x2ea   : > { %2498 = shalt.err (!%p2495_p7)
}
 0x2eb   : > { %s2499_s17 = scalar_lea.hbm %s2775_s30, 16  ;;  %s2503_s25 = scalar_lea.hbm %s2824_s5, 32 }
 0x2ec   : > { %p2500_p9 = scmp.ne.s32.totalorder %s2775_s30, %s2499_s17  ;;  %p2504_p5 = scmp.lt.u32.totalorder %s2775_s30, %s2824_s5 }
 0x2ed   : > { %p2505_p11 = scmp.lt.u32.totalorder %s2503_s25, %s2499_s17  ;;  %p2507_p4 = scmp.lt.u32.totalorder %s2499_s17, %s2775_s30 }
 0x2ee   : > { %p2501_p2 = pnand %p2500_p9, %p2689_p12 }
 0x2ef   : > { %p2506_p1 = por %p2505_p11, %p2504_p5 }
 0x2f0   : > { %p2502_p0 = pneg %p2501_p2 }
 0x2f1   : > { %p2508_p6 = por %p2507_p4, %p2506_p1 }
 0x2f3   : > { %p2509_p8 = pnand %p2508_p6, %p2502_p0 }
 0x2f5   : > { %2512 = shalt.err (!%p2509_p8)
}
 0x2f6   : > { %2089 = dma.vmem_to_hbm [thread:$0]  (%p2689_p12), %s2777_s11, 16, %s2775_s30, %s1763_s13  }
 0x2f7 PF: > { %s1787_s29 = sand.u32 1, %s2543_s20   ;;  %p2839_p10 = scmp.ne.s32.totalorder %s2829_s26, 0 }
 0x2f8   : > { %p2840_p13 = scmp.ge.s32.totalorder %s2555_s23, 2  ;;  %s1788_s8 = scalar_lea.sflag [#allocation5], %s1787_s29 }
 0x2fa   : > { %p2100_p3 = pnand %p2840_p13, %p2839_p10 }
 0x2fc   : > { %2538 = dma.done.wait (!%p2100_p3), %s1788_s8, 16  }
 0x2fd   : > { %2540 = vsyncadd (!%p2100_p3), %s1788_s8, 4294967280  ;;  %p21_p7 = scmp.ge.s32.totalorder %s2654_s6, 4   ;;  %s2841_s20 = smov %s2547_s21 }
 0x2fe   : > { %s2842_s21 = smov %s2551_s22  ;;  %s2843_s22 = smov %s2685_s28 }
 0x2ff   : > { %s2844_s23 = smov %s2654_s6  ;;  %23 = sbr.rel (!%p21_p7) target bundleno = 9 (0x9), region = 89 }
 0x306   :  { %1792 = vsyncpa [#allocation4], 1 }
 0x307   :  { %1794 = vsyncpa [#allocation4 + $0x1], 1 }
 0x308   :  { %1795 = vsyncpa [#allocation7], 1 }
 0x309   :  { %1796 = vsyncpa [#allocation5], 1 }
 0x30a   :  { %1798 = vsyncpa [#allocation5 + $0x1], 1 }

</bundles_post_ra>
